<compile_context>
chip_gen: v7x
topology: tpu7x:2x2x1
jax: 0.10.0
libtpu: 0.0.40
codegen_flags: <defaults>
</compile_context>

<pallas_src>
import jax
import jax.numpy as jnp
from jax.experimental import pallas as pl
from jax.experimental.pallas import tpu as pltpu


_TARGET_BLOCK_BYTES = 4 * 1024 * 1024   # ~4 MiB per block (per array)
_VMEM_LIMIT_BYTES = 32 * 1024 * 1024    # covers 2 specs x 2 buffers x 4 MiB + slack


def _swish_kernel(x_ref, o_ref):
    # Compute in f32 (parity with torch.sigmoid); compute hides under DMA.
    xf = x_ref[...].astype(jnp.float32)
    o_ref[...] = (xf * jax.nn.sigmoid(xf)).astype(o_ref.dtype)


@jax.jit
def swish(x: jax.Array) -> jax.Array:
    """Elementwise Swish matching torch's `x * torch.sigmoid(x)` (float dtypes)."""
    orig_shape = x.shape
    dtype = x.dtype
    n = int(x.size)                      # static under jit
    if n == 0:
        return x
    itemsize = jnp.dtype(dtype).itemsize

    # Lane width: largest multiple of 128 (<=1024) dividing n -> no padding for
    # typical NCHW activation sizes; otherwise width=128 with a tiny row pad.
    width = next((w for w in (1024, 512, 256, 128) if n % w == 0), 128)
    pad = (-n) % width
    rows = (n + pad) // width

    # Row tile for ~_TARGET_BLOCK_BYTES per block; multiple of 8 sublanes.
    tr = max(8, (_TARGET_BLOCK_BYTES // (width * itemsize)) // 8 * 8)
    if rows <= tr:
        tr = rows                        # one block == full array (always legal)
    grid = pl.cdiv(rows, tr)             # partial last block handled by Pallas

    x_flat = jnp.ravel(x)
    if pad:
        x_flat = jnp.pad(x_flat, (0, pad))   # swish(0) == 0, padding is exact
    x2d = x_flat.reshape(rows, width)

    out2d = pl.pallas_call(
        _swish_kernel,
        out_shape=jax.ShapeDtypeStruct((rows, width), dtype),
        grid_spec=pltpu.PrefetchScalarGridSpec(
            num_scalar_prefetch=0,
            grid=(grid,),
            in_specs=[pl.BlockSpec((tr, width), lambda i: (i, 0))],
            out_specs=pl.BlockSpec((tr, width), lambda i: (i, 0)),
        ),
        compiler_params=pltpu.CompilerParams(
            dimension_semantics=("parallel",),
            vmem_limit_bytes=_VMEM_LIMIT_BYTES,
        ),
        cost_estimate=pl.CostEstimate(
            flops=2 * rows * width,
            transcendentals=rows * width,
            bytes_accessed=2 * rows * width * itemsize,
        ),
    )(x2d)

    if pad:
        return out2d.reshape(-1)[:n].reshape(orig_shape)
    return out2d.reshape(orig_shape)


# TODO(synk): if this Swish directly follows a conv/matmul in the backbone,
# fuse it into that producer kernel's epilogue instead of a standalone pass.


if __name__ == "__main__":
    key = jax.random.PRNGKey(0)
    x = jax.random.normal(key, (2, 4, 16, 16), dtype=jnp.float32)  # NCHW

    y = swish(x)
    jax.block_until_ready(y)

    # Correctness check against plain JAX reference.
    y_ref = x * jax.nn.sigmoid(x)
    assert y.shape == x.shape and y.dtype == x.dtype
    assert jnp.allclose(y, y_ref, atol=1e-6, rtol=1e-6)

    print("KERNEL_OK")
</pallas_src>

<mosaic_0001>
module attributes {stable_mosaic.version = 11 : i64} {
  func.func @_swish_kernel(%arg0: i32, %arg1: memref<2x1024xf32, #tpu.memory_space<vmem>>, %arg2: memref<2x1024xf32, #tpu.memory_space<vmem>>) attributes {dimension_semantics = [#tpu.dimension_semantics<parallel>], iteration_bounds = array<i64: 1>, scalar_prefetch = 0 : i64, scratch_operands = 0 : i64, tpu.core_type = #tpu.core_type<tc>, window_params = [{transform_indices = @transform_0, window_bounds = array<i64: 2, 1024>}, {transform_indices = @transform_1, window_bounds = array<i64: 2, 1024>}]} {
    %c0 = arith.constant 0 : index
    %c0_0 = arith.constant 0 : index
    %0 = vector.load %arg1[%c0, %c0_0] : memref<2x1024xf32, #tpu.memory_space<vmem>>, vector<2x1024xf32>
    %1 = arith.negf %0 : vector<2x1024xf32>
    %2 = math.exp %1 : vector<2x1024xf32>
    %cst = arith.constant 1.000000e+00 : f32
    %3 = vector.broadcast %cst : f32 to vector<2x1024xf32>
    %4 = arith.addf %3, %2 : vector<2x1024xf32>
    %5 = arith.divf %3, %4 : vector<2x1024xf32>
    %6 = arith.mulf %0, %5 : vector<2x1024xf32>
    %c0_1 = arith.constant 0 : index
    %c0_2 = arith.constant 0 : index
    %7 = vector.load %arg2[%c0_1, %c0_2] : memref<2x1024xf32, #tpu.memory_space<vmem>>, vector<2x1024xf32>
    tpu.vector_store %arg2[%c0_1, %c0_2], %6 {strides = array<i32>} : memref<2x1024xf32, #tpu.memory_space<vmem>>, vector<2x1024xf32>,
    return
  }
  func.func @transform_0(%arg0: i32) -> (i32, i32) {
    %c0_i32 = arith.constant 0 : i32
    %c0_i32_0 = arith.constant 0 : i32
    return %arg0, %c0_i32 : i32, i32
  }
  func.func @transform_1(%arg0: i32) -> (i32, i32) {
    %c0_i32 = arith.constant 0 : i32
    %c0_i32_0 = arith.constant 0 : i32
    return %arg0, %c0_i32 : i32, i32
  }
}

</mosaic_0001>

<bundles_post_ra>
// kernel: swish.1
= control target key start
LH: loop header
LB: loop body
LE: loop exit
PB: predicated region body
PF: predicated region fallthrough
CT: control target
= control target key end

     0   :  { %s62_s0 = inlined_call_operand.vmem [shape: f32[2,1024], index: 0, kind: input, shape index: {}]   ;;  %s63_s1 = inlined_call_operand.vmem [shape: f32[2,1024], index: 1, kind: output, shape index: {}]  }
   0x1   :  { %v8_v0 = vld [vmem:[%s62_s0] sm:$0xff]  ;;  %v9_v1 = vld [vmem:[%s62_s0 + $0x8] sm:$0xff] }
   0x2   :  { %v30_v2 = vmul.f32 -1.442695, %v8_v0  ;;  %v31_v3 = vmul.f32 -1.442695, %v9_v1 }
   0x4   :  { %32 = vpow2.f32 %v30_v2 }
   0x5   :  { %34 = vpow2.f32 %v31_v3 }
   0xe   :  { %v33_v4 = vpop.eup %32 }
   0xf   :  { %v35_v5 = vpop.eup %34  ;;  %v16_v6 = vadd.f32 1.0, %v33_v4 }
  0x10   :  { %v17_v7 = vadd.f32 1.0, %v35_v5 }
  0x11   :  { %36 = vrcp.f32 %v16_v6 }
  0x12   :  { %38 = vrcp.f32 %v17_v7 }
  0x1b   :  { %v37_v8 = vpop.eup %36 }
  0x1c   :  { %v39_v9 = vpop.eup %38  ;;  %v22_v10 = vmul.f32 %v37_v8, %v8_v0 }
  0x1d   :  { %v23_v11 = vmul.f32 %v39_v9, %v9_v1 }
  0x1e   :  { %24 = vst [vmem:[%s63_s1] sm:$0xff] %v22_v10 }
  0x1f   :  { %25 = vst [vmem:[%s63_s1 + $0x8] sm:$0xff] %v23_v11 }

</bundles_post_ra>
